<compile_context>
chip_gen: v7x
topology: tpu7x:2x2x1
jax: 0.10.0
libtpu: 0.0.40
codegen_flags: <defaults>
</compile_context>

<pallas_src>
import jax
import jax.numpy as jnp
from jax import lax
from jax.experimental import pallas as pl
from jax.experimental.pallas import tpu as pltpu

_SUB = 8
_LANE = 128
_TILE = _SUB * _LANE          # 1024 f32 elements = one (8, 128) vreg tile


def _chip_config():
    """Per-generation tiling parameters (block size / chunking / VMEM budget)."""
    try:
        kind = jax.devices()[0].device_kind.lower()
    except Exception:
        kind = ""
    if "v7" in kind:
        # 2 TensorCores, 64 MiB VMEM/TC, ~3.2 TB/s: big blocks, 3-deep input
        # buffering, and a real 2-core split of the chunk axis.
        return dict(block_rows=8192, num_chunks=2, vmem_limit=40 << 20,
                    input_buffers=3, core_parallel=True)
    if "v6" in kind:
        # 1 TC: 4 MiB blocks, 2 inputs x 2 buffers = 16 MiB double-buffered.
        return dict(block_rows=8192, num_chunks=1, vmem_limit=40 << 20,
                    input_buffers=2, core_parallel=False)
    if "v5" in kind:
        # 16 MiB scoped default: 2 MiB blocks -> 8 MiB double-buffered.
        return dict(block_rows=4096, num_chunks=1, vmem_limit=24 << 20,
                    input_buffers=2, core_parallel=False)
    # Unknown / older chips: conservative defaults that fit any scoped limit.
    return dict(block_rows=2048, num_chunks=1, vmem_limit=None,
                input_buffers=2, core_parallel=False)


def _make_mse_kernel(rows, block_rows, blocks_per_chunk, total_blocks,
                     num_chunks, inv_n):
    """Build a kernel specialized to the (static) tiling parameters."""
    # A mask is only *possible* when the grid over-covers the array:
    #  - the last real block is partial (rows % block_rows != 0), or
    #  - the chunk split is ragged (a clamped duplicate block exists).
    may_need_mask = (rows % block_rows != 0) or \
                    (blocks_per_chunk * num_chunks != total_blocks)
    folds = block_rows // _SUB

    def kernel(p_ref, t_ref, o_ref):
        c = pl.program_id(0)          # (core-)parallel chunk axis
        j = pl.program_id(1)          # reduction axis within the chunk

        @pl.when(j == 0)
        def _init():
            o_ref[...] = jnp.zeros_like(o_ref)

        d = p_ref[...].astype(jnp.float32) - t_ref[...].astype(jnp.float32)

        def _accum(x):
            # Fold (block_rows, 128) -> (8, 128): vreg-wise VPU adds only;
            # the single cross-lane reduction happens outside the kernel.
            o_ref[0] += jnp.sum((x * x).reshape(folds, _SUB, _LANE), axis=0)

        if may_need_mask:
            row0 = (c * blocks_per_chunk + j) * block_rows
            is_edge = row0 + block_rows > rows   # partial or duplicate block

            @pl.when(is_edge)
            def _masked():
                # Zero rows past the valid extent (partial edge block and
                # clamped duplicate blocks).  Only the cold edge path pays
                # the iota + compare + select.
                row_ids = lax.broadcasted_iota(
                    jnp.int32, (block_rows, _LANE), 0)
                _accum(jnp.where(row_ids < (rows - row0), d, 0.0))

            @pl.when(jnp.logical_not(is_edge))
            def _plain():
                _accum(d)
        else:
            _accum(d)

        @pl.when(j == pl.num_programs(1) - 1)
        def _finalize():
            # Fold the 1/n normalization into the last write (free VPU op).
            o_ref[...] = o_ref[...] * jnp.float32(inv_n)

    return kernel


def curve_loss(prediction, target):
    """Pallas equivalent of curveLoss.forward(prediction, target)."""
    assert prediction.shape == target.shape, "prediction/target shape mismatch"
    n = prediction.size
    cfg = _chip_config()

    p = prediction.reshape(-1)
    t = target.reshape(-1)

    if n % _LANE == 0 and n >= _TILE:
        # Hot path: zero-copy reshape, no extra HBM pass.  Ragged rows
        # (n % 1024 != 0) are handled by the in-kernel edge mask.
        rows = n // _LANE
    else:
        # Cold path (tiny or non-128-aligned inputs): zero-pad up to whole
        # (8, 128) tiles.  Zero padding contributes exactly 0 to the sum and
        # inv_n still uses the original n.
        # TODO(synk): large tensors with n % 128 != 0 still pay a full pad
        # copy here; callers should prefer 128-aligned element counts.
        pad = -n % _TILE
        p = jnp.pad(p, (0, pad))
        t = jnp.pad(t, (0, pad))
        rows = (n + pad) // _LANE

    p2 = p.reshape(rows, _LANE)
    t2 = t.reshape(rows, _LANE)

    # Largest multiple-of-8 block that fits the per-chip VMEM budget.
    block_rows = min(cfg["block_rows"], (rows // _SUB) * _SUB)
    total_blocks = pl.cdiv(rows, block_rows)
    # Chunk (outer, parallel) axis: >1 only on multi-TensorCore chips (v7x);
    # on 1-TC chips it would only force the mask path + a duplicate DMA.
    num_chunks = min(cfg["num_chunks"], total_blocks)
    blocks_per_chunk = pl.cdiv(total_blocks, num_chunks)

    def in_map(c, j):
        # Clamp so a ragged chunk split never issues an out-of-range block
        # DMA; the duplicated block is zeroed by the in-kernel edge mask.
        return (jnp.minimum(c * blocks_per_chunk + j, total_blocks - 1), 0)

    in_spec_kwargs = {}
    if cfg["input_buffers"] != 2:
        in_spec_kwargs["pipeline_mode"] = pl.Buffered(cfg["input_buffers"])
    in_spec = pl.BlockSpec((block_rows, _LANE), in_map, **in_spec_kwargs)

    if num_chunks > 1 and cfg["core_parallel"]:
        dims = (pltpu.CORE_PARALLEL, pltpu.ARBITRARY)
    else:
        dims = ("parallel", "arbitrary")
    cp_kwargs = dict(dimension_semantics=dims)
    if cfg["vmem_limit"] is not None:
        cp_kwargs["vmem_limit_bytes"] = cfg["vmem_limit"]

    kernel = _make_mse_kernel(rows, block_rows, blocks_per_chunk,
                              total_blocks, num_chunks, 1.0 / n)

    partials = pl.pallas_call(
        kernel,
        out_shape=jax.ShapeDtypeStruct((num_chunks, _SUB, _LANE), jnp.float32),
        grid_spec=pltpu.PrefetchScalarGridSpec(
            num_scalar_prefetch=0,
            grid=(num_chunks, blocks_per_chunk),
            in_specs=[in_spec, in_spec],
            out_specs=pl.BlockSpec((1, _SUB, _LANE), lambda c, j: (c, 0, 0)),
        ),
        compiler_params=pltpu.CompilerParams(**cp_kwargs),
    )(p2, t2)

    # Per-chunk partials are already scaled by 1/n; one tiny final reduce.
    return jnp.sum(partials)


if __name__ == "__main__":
    key = jax.random.PRNGKey(0)
    loss_fn = jax.jit(curve_loss)

    def _check(shape):
        k1, k2 = jax.random.split(jax.random.fold_in(key, hash(shape) & 0xFFFF))
        prediction = jax.random.normal(k1, shape, dtype=jnp.float32)
        target = jax.random.normal(k2, shape, dtype=jnp.float32)
        loss = loss_fn(prediction, target)
        jax.block_until_ready(loss)
        ref = jnp.mean((prediction - target) ** 2)
        assert jnp.allclose(loss, ref, rtol=1e-5, atol=1e-6), (shape, loss, ref)

    # Small NCHW shapes consistent with the THz autoencoder usage.
    _check((2, 4, 16, 16))      # 1024-aligned: single block, no mask, no pad
    _check((3, 5, 7, 11))       # non-128-aligned element count -> pad path
    _check((2, 3, 16, 16))      # 128- but not 1024-aligned -> no pad, edge mask
    _check((3, 250, 32, 32))    # larger aligned: multi/partial block per chip

    print("KERNEL_OK")
</pallas_src>

<mosaic_0001>
module attributes {stable_mosaic.version = 11 : i64} {
  func.func @kernel(%arg0: i32, %arg1: i32, %arg2: memref<16x128xf32, #tpu.memory_space<vmem>>, %arg3: memref<16x128xf32, #tpu.memory_space<vmem>>, %arg4: memref<1x8x128xf32, #tpu.memory_space<vmem>>) attributes {dimension_semantics = [#tpu.dimension_semantics<parallel>, #tpu.dimension_semantics<arbitrary>], iteration_bounds = array<i64: 1, 1>, scalar_prefetch = 0 : i64, scratch_operands = 0 : i64, tpu.core_type = #tpu.core_type<tc>, window_params = [{transform_indices = @transform_0, window_bounds = array<i64: 16, 128>}, {transform_indices = @transform_1, window_bounds = array<i64: 16, 128>}, {transform_indices = @transform_2, window_bounds = array<i64: 1, 8, 128>}]} {
    %c0_i32 = arith.constant 0 : i32
    %0 = arith.cmpi eq, %arg1, %c0_i32 : i32
    %1 = arith.extui %0 : i1 to i32
    %c0_i32_0 = arith.constant 0 : i32
    %2 = arith.cmpi ne, %1, %c0_i32_0 : i32
    scf.if %2 {
      %cst_12 = arith.constant 0.000000e+00 : f32
      %18 = vector.broadcast %cst_12 : f32 to vector<1x8x128xf32>
      %c0_13 = arith.constant 0 : index
      %c0_14 = arith.constant 0 : index
      %c0_15 = arith.constant 0 : index
      %19 = vector.load %arg4[%c0_13, %c0_14, %c0_15] : memref<1x8x128xf32, #tpu.memory_space<vmem>>, vector<1x8x128xf32>
      tpu.vector_store %arg4[%c0_13, %c0_14, %c0_15], %18 {strides = array<i32>} : memref<1x8x128xf32, #tpu.memory_space<vmem>>, vector<1x8x128xf32>,
    } else {
    }
    %c0 = arith.constant 0 : index
    %c0_1 = arith.constant 0 : index
    %3 = vector.load %arg2[%c0, %c0_1] : memref<16x128xf32, #tpu.memory_space<vmem>>, vector<16x128xf32>
    %c0_2 = arith.constant 0 : index
    %c0_3 = arith.constant 0 : index
    %4 = vector.load %arg3[%c0_2, %c0_3] : memref<16x128xf32, #tpu.memory_space<vmem>>, vector<16x128xf32>
    %5 = arith.subf %3, %4 : vector<16x128xf32>
    %c0_4 = arith.constant 0 : index
    %c0_5 = arith.constant 0 : index
    %c0_6 = arith.constant 0 : index
    %6 = vector.load %arg4[%c0_4, %c0_5, %c0_6] : memref<1x8x128xf32, #tpu.memory_space<vmem>>, vector<1x8x128xf32>
    %7 = vector.shape_cast %6 : vector<1x8x128xf32> to vector<8x128xf32>
    %8 = arith.mulf %5, %5 : vector<16x128xf32>
    %9 = vector.shape_cast %8 : vector<16x128xf32> to vector<2x8x128xf32>
    %cst = arith.constant dense<0.000000e+00> : vector<8x128xf32>
    %10 = vector.multi_reduction <add>, %9, %cst [0] : vector<2x8x128xf32> to vector<8x128xf32>
    %11 = arith.addf %7, %10 : vector<8x128xf32>
    %c0_7 = arith.constant 0 : index
    %c0_8 = arith.constant 0 : index
    %c0_9 = arith.constant 0 : index
    %12 = vector.load %arg4[%c0_7, %c0_8, %c0_9] : memref<1x8x128xf32, #tpu.memory_space<vmem>>, vector<1x8x128xf32>
    %13 = vector.shape_cast %12 : vector<1x8x128xf32> to vector<8x128xf32>
    %14 = vector.shape_cast %11 : vector<8x128xf32> to vector<1x8x128xf32>
    tpu.vector_store %arg4[%c0_7, %c0_8, %c0_9], %14 {strides = array<i32>} : memref<1x8x128xf32, #tpu.memory_space<vmem>>, vector<1x8x128xf32>,
    %c0_i32_10 = arith.constant 0 : i32
    %15 = arith.cmpi eq, %arg1, %c0_i32_10 : i32
    %16 = arith.extui %15 : i1 to i32
    %c0_i32_11 = arith.constant 0 : i32
    %17 = arith.cmpi ne, %16, %c0_i32_11 : i32
    scf.if %17 {
      %c0_12 = arith.constant 0 : index
      %c0_13 = arith.constant 0 : index
      %c0_14 = arith.constant 0 : index
      %18 = vector.load %arg4[%c0_12, %c0_13, %c0_14] : memref<1x8x128xf32, #tpu.memory_space<vmem>>, vector<1x8x128xf32>
      %cst_15 = arith.constant 4.8828125E-4 : f32
      %19 = vector.broadcast %cst_15 : f32 to vector<1x8x128xf32>
      %20 = arith.mulf %18, %19 : vector<1x8x128xf32>
      %c0_16 = arith.constant 0 : index
      %c0_17 = arith.constant 0 : index
      %c0_18 = arith.constant 0 : index
      %21 = vector.load %arg4[%c0_16, %c0_17, %c0_18] : memref<1x8x128xf32, #tpu.memory_space<vmem>>, vector<1x8x128xf32>
      tpu.vector_store %arg4[%c0_16, %c0_17, %c0_18], %20 {strides = array<i32>} : memref<1x8x128xf32, #tpu.memory_space<vmem>>, vector<1x8x128xf32>,
    } else {
    }
    return
  }
  func.func @transform_0(%arg0: i32, %arg1: i32) -> (i32, i32) {
    %c1_i32 = arith.constant 1 : i32
    %0 = arith.muli %arg0, %c1_i32 : i32
    %1 = arith.addi %0, %arg1 : i32
    %c0_i32 = arith.constant 0 : i32
    %2 = arith.minsi %1, %c0_i32 : i32
    %c0_i32_0 = arith.constant 0 : i32
    %c0_i32_1 = arith.constant 0 : i32
    return %2, %c0_i32_0 : i32, i32
  }
  func.func @transform_1(%arg0: i32, %arg1: i32) -> (i32, i32) {
    %c1_i32 = arith.constant 1 : i32
    %0 = arith.muli %arg0, %c1_i32 : i32
    %1 = arith.addi %0, %arg1 : i32
    %c0_i32 = arith.constant 0 : i32
    %2 = arith.minsi %1, %c0_i32 : i32
    %c0_i32_0 = arith.constant 0 : i32
    %c0_i32_1 = arith.constant 0 : i32
    return %2, %c0_i32_0 : i32, i32
  }
  func.func @transform_2(%arg0: i32, %arg1: i32) -> (i32, i32, i32) {
    %c0_i32 = arith.constant 0 : i32
    %c0_i32_0 = arith.constant 0 : i32
    %c0_i32_1 = arith.constant 0 : i32
    return %arg0, %c0_i32, %c0_i32_0 : i32, i32, i32
  }
}

</mosaic_0001>

<bundles_post_ra>
// kernel: curve_loss.1
= control target key start
LH: loop header
LB: loop body
LE: loop exit
PB: predicated region body
PF: predicated region fallthrough
CT: control target
= control target key end

     0   :  { %s145_s0 = inlined_call_operand.vmem [shape: f32[16,128], index: 0, kind: input, shape index: {}]   ;;  %s146_s1 = inlined_call_operand.vmem [shape: f32[16,128], index: 1, kind: input, shape index: {}]   ;;  %s147_s2 = inlined_call_operand.vmem [shape: f32[1,8,128], index: 2, kind: output, shape index: {}]  }
   0x1   :  { %v80_v0 = vld [vmem:[%s145_s0] sm:$0xff]  ;;  %v81_v1 = vld [vmem:[%s145_s0 + $0x8] sm:$0xff] }
   0x2   :  { %v82_v2 = vld [vmem:[%s146_s1] sm:$0xff]  ;;  %v83_v3 = vld [vmem:[%s146_s1 + $0x8] sm:$0xff] }
   0x3   :  { %v84_v4 = vsub.f32 %v80_v0, %v82_v2  ;;  %v85_v5 = vsub.f32 %v81_v1, %v83_v3 }
   0x5   :  { %v87_v6 = vmul.f32 %v84_v4, %v84_v4  ;;  %v88_v7 = vmul.f32 %v85_v5, %v85_v5 }
   0x7   :  { %v89_v8 = vadd.f32 %v88_v7, %v87_v6 }
   0x9   :  { %v96_v9 = vmul.f32 0.00048828125, %v89_v8 }
   0xb   :  { %97 = vst [vmem:[%s147_s2] sm:$0xff] %v96_v9 }

</bundles_post_ra>
